<compile_context>
chip_gen: v7x
topology: tpu7x:2x2x1
jax: 0.10.0
libtpu: 0.0.40
codegen_flags: <defaults>
</compile_context>

<pallas_src>
import functools
import math

import jax
import jax.numpy as jnp
from jax import lax
from jax.experimental import pallas as pl
from jax.experimental.pallas import tpu as pltpu

D_MODEL = 350
EPS = 1e-5
ROW_BLOCK = 128  # tokens (rows) per grid step


def _add_layer_norm_kernel(a_ref, b_ref, gamma_ref, beta_ref, o_ref, *, eps):
    # a_ref/b_ref/o_ref: (ROW_BLOCK, D) f32 tiles; gamma/beta: (1, D) f32.
    x = a_ref[...] + b_ref[...]
    mean = jnp.mean(x, axis=-1, keepdims=True)
    centered = x - mean
    var = jnp.mean(centered * centered, axis=-1, keepdims=True)
    inv = lax.rsqrt(var + eps)  # EUP rsqrt, biased variance like torch LayerNorm
    o_ref[...] = centered * inv * gamma_ref[...] + beta_ref[...]


def add_layer_norm(res_input1, res_input2, gamma, beta, eps=EPS):
    """Equivalent of AddLayerNorm.forward: LayerNorm(res_input1 + res_input2)."""
    assert res_input1.shape == res_input2.shape
    d = res_input1.shape[-1]
    lead = res_input1.shape[:-1]
    n = math.prod(lead) if lead else 1

    a = res_input1.reshape(n, d)
    b = res_input2.reshape(n, d)

    # Pad the row (token) axis up to a multiple of ROW_BLOCK; padded rows are
    # all-zero (mean=0, var=0 -> finite via eps) and sliced off afterwards.
    n_pad = -(-n // ROW_BLOCK) * ROW_BLOCK
    if n_pad != n:
        pad = ((0, n_pad - n), (0, 0))
        a = jnp.pad(a, pad)
        b = jnp.pad(b, pad)

    gamma2 = gamma.reshape(1, d).astype(res_input1.dtype)
    beta2 = beta.reshape(1, d).astype(res_input1.dtype)

    kernel = functools.partial(_add_layer_norm_kernel, eps=eps)

    out = pl.pallas_call(
        kernel,
        out_shape=jax.ShapeDtypeStruct((n_pad, d), res_input1.dtype),
        grid_spec=pltpu.PrefetchScalarGridSpec(
            num_scalar_prefetch=0,
            grid=(n_pad // ROW_BLOCK,),
            in_specs=[
                pl.BlockSpec((ROW_BLOCK, d), lambda i: (i, 0)),
                pl.BlockSpec((ROW_BLOCK, d), lambda i: (i, 0)),
                pl.BlockSpec((1, d), lambda i: (0, 0)),  # gamma, resident
                pl.BlockSpec((1, d), lambda i: (0, 0)),  # beta, resident
            ],
            out_specs=pl.BlockSpec((ROW_BLOCK, d), lambda i: (i, 0)),
        ),
        compiler_params=pltpu.CompilerParams(
            dimension_semantics=("parallel",),  # independent row blocks (v7x 2-TC)
        ),
    )(a, b, gamma2, beta2)

    out = out[:n]
    return out.reshape(*lead, d)


if __name__ == "__main__":
    key = jax.random.PRNGKey(0)
    k1, k2 = jax.random.split(key)

    batch, seq = 2, 8
    x1 = jax.random.normal(k1, (batch, seq, D_MODEL), dtype=jnp.float32)
    x2 = jax.random.normal(k2, (batch, seq, D_MODEL), dtype=jnp.float32)

    # nn.LayerNorm default init: weight (gamma) = 1, bias (beta) = 0.
    gamma = jnp.ones((D_MODEL,), dtype=jnp.float32)
    beta = jnp.zeros((D_MODEL,), dtype=jnp.float32)

    out = add_layer_norm(x1, x2, gamma, beta)
    out = jax.block_until_ready(out)

    # Pure-JAX reference matching torch.nn.LayerNorm semantics (biased var).
    x = x1 + x2
    mean = jnp.mean(x, axis=-1, keepdims=True)
    var = jnp.mean((x - mean) ** 2, axis=-1, keepdims=True)
    ref = (x - mean) / jnp.sqrt(var + EPS) * gamma + beta

    assert out.shape == (batch, seq, D_MODEL)
    assert jnp.allclose(out, ref, atol=1e-5, rtol=1e-5), (
        "Pallas AddLayerNorm mismatch vs reference"
    )

    print("KERNEL_OK")
</pallas_src>

<mosaic_0001>
module attributes {stable_mosaic.version = 11 : i64} {
  func.func @_add_layer_norm_kernel(%arg0: i32, %arg1: memref<128x350xf32, #tpu.memory_space<vmem>>, %arg2: memref<128x350xf32, #tpu.memory_space<vmem>>, %arg3: memref<1x350xf32, #tpu.memory_space<vmem>>, %arg4: memref<1x350xf32, #tpu.memory_space<vmem>>, %arg5: memref<128x350xf32, #tpu.memory_space<vmem>>) attributes {dimension_semantics = [#tpu.dimension_semantics<parallel>], iteration_bounds = array<i64: 1>, scalar_prefetch = 0 : i64, scratch_operands = 0 : i64, tpu.core_type = #tpu.core_type<tc>, window_params = [{transform_indices = @transform_0, window_bounds = array<i64: 128, 350>}, {transform_indices = @transform_1, window_bounds = array<i64: 128, 350>}, {pipeline_mode = #tpu.pipeline_mode<synchronous>, transform_indices = @transform_2, window_bounds = array<i64: 1, 350>}, {pipeline_mode = #tpu.pipeline_mode<synchronous>, transform_indices = @transform_3, window_bounds = array<i64: 1, 350>}, {transform_indices = @transform_4, window_bounds = array<i64: 128, 350>}]} {
    %c0 = arith.constant 0 : index
    %c0_0 = arith.constant 0 : index
    %0 = vector.load %arg1[%c0, %c0_0] : memref<128x350xf32, #tpu.memory_space<vmem>>, vector<128x350xf32>
    %c0_1 = arith.constant 0 : index
    %c0_2 = arith.constant 0 : index
    %1 = vector.load %arg2[%c0_1, %c0_2] : memref<128x350xf32, #tpu.memory_space<vmem>>, vector<128x350xf32>
    %2 = arith.addf %0, %1 : vector<128x350xf32>
    %cst = arith.constant dense<0.000000e+00> : vector<128xf32>
    %3 = vector.multi_reduction <add>, %2, %cst [1] : vector<128x350xf32> to vector<128xf32>
    %4 = vector.shape_cast %3 : vector<128xf32> to vector<128x1xf32>
    %cst_3 = arith.constant 3.500000e+02 : f32
    %5 = vector.broadcast %cst_3 : f32 to vector<128x1xf32>
    %6 = arith.divf %4, %5 : vector<128x1xf32>
    %7 = vector.broadcast %6 : vector<128x1xf32> to vector<128x350xf32>
    %8 = arith.subf %2, %7 : vector<128x350xf32>
    %9 = arith.mulf %8, %8 : vector<128x350xf32>
    %cst_4 = arith.constant dense<0.000000e+00> : vector<128xf32>
    %10 = vector.multi_reduction <add>, %9, %cst_4 [1] : vector<128x350xf32> to vector<128xf32>
    %11 = vector.shape_cast %10 : vector<128xf32> to vector<128x1xf32>
    %cst_5 = arith.constant 3.500000e+02 : f32
    %12 = vector.broadcast %cst_5 : f32 to vector<128x1xf32>
    %13 = arith.divf %11, %12 : vector<128x1xf32>
    %cst_6 = arith.constant 9.99999974E-6 : f32
    %14 = vector.broadcast %cst_6 : f32 to vector<128x1xf32>
    %15 = arith.addf %13, %14 : vector<128x1xf32>
    %16 = math.rsqrt %15 : vector<128x1xf32>
    %17 = vector.broadcast %16 : vector<128x1xf32> to vector<128x350xf32>
    %18 = arith.mulf %8, %17 : vector<128x350xf32>
    %c0_7 = arith.constant 0 : index
    %c0_8 = arith.constant 0 : index
    %19 = vector.load %arg3[%c0_7, %c0_8] : memref<1x350xf32, #tpu.memory_space<vmem>>, vector<1x350xf32>
    %20 = vector.broadcast %19 : vector<1x350xf32> to vector<128x350xf32>
    %21 = arith.mulf %18, %20 : vector<128x350xf32>
    %c0_9 = arith.constant 0 : index
    %c0_10 = arith.constant 0 : index
    %22 = vector.load %arg4[%c0_9, %c0_10] : memref<1x350xf32, #tpu.memory_space<vmem>>, vector<1x350xf32>
    %23 = vector.broadcast %22 : vector<1x350xf32> to vector<128x350xf32>
    %24 = arith.addf %21, %23 : vector<128x350xf32>
    %c0_11 = arith.constant 0 : index
    %c0_12 = arith.constant 0 : index
    %25 = vector.load %arg5[%c0_11, %c0_12] : memref<128x350xf32, #tpu.memory_space<vmem>>, vector<128x350xf32>
    tpu.vector_store %arg5[%c0_11, %c0_12], %24 {strides = array<i32>} : memref<128x350xf32, #tpu.memory_space<vmem>>, vector<128x350xf32>,
    return
  }
  func.func @transform_0(%arg0: i32) -> (i32, i32) {
    %c0_i32 = arith.constant 0 : i32
    %c0_i32_0 = arith.constant 0 : i32
    return %arg0, %c0_i32 : i32, i32
  }
  func.func @transform_1(%arg0: i32) -> (i32, i32) {
    %c0_i32 = arith.constant 0 : i32
    %c0_i32_0 = arith.constant 0 : i32
    return %arg0, %c0_i32 : i32, i32
  }
  func.func @transform_2(%arg0: i32) -> (i32, i32) {
    %c0_i32 = arith.constant 0 : i32
    %c0_i32_0 = arith.constant 0 : i32
    %c0_i32_1 = arith.constant 0 : i32
    return %c0_i32, %c0_i32_0 : i32, i32
  }
  func.func @transform_3(%arg0: i32) -> (i32, i32) {
    %c0_i32 = arith.constant 0 : i32
    %c0_i32_0 = arith.constant 0 : i32
    %c0_i32_1 = arith.constant 0 : i32
    return %c0_i32, %c0_i32_0 : i32, i32
  }
  func.func @transform_4(%arg0: i32) -> (i32, i32) {
    %c0_i32 = arith.constant 0 : i32
    %c0_i32_0 = arith.constant 0 : i32
    return %arg0, %c0_i32 : i32, i32
  }
}

</mosaic_0001>

<bundles_post_ra>
// kernel: tpu_custom_call.1
= control target key start
LH: loop header
LB: loop body
LE: loop exit
PB: predicated region body
PF: predicated region fallthrough
CT: control target
= control target key end

     0   :  { %vm162_vm0 = vcmask 769024   ;;  %s1796_s0 = inlined_call_operand.vmem [shape: f32[128,350], index: 0, kind: input, shape index: {}]   ;;  %s1797_s1 = inlined_call_operand.vmem [shape: f32[128,350], index: 1, kind: input, shape index: {}]   ;;  %s1798_s2 = inlined_call_operand.vmem [shape: f32[1,350], index: 2, kind: input, shape index: {}]   ;;  %s1799_s3 = inlined_call_operand.vmem [shape: f32[1,350], index: 3, kind: input, shape index: {}]   ;;  %s1800_s4 = inlined_call_operand.vmem [shape: f32[128,350], index: 4, kind: output, shape index: {}]  }
   0x1   :  { %v17_v0 = vld [vmem:[%s1796_s0] sm:$0xff]  ;;  %v18_v1 = vld [vmem:[%s1796_s0 + $0x8] sm:$0xff]  ;;  %v19_v2 = vld [vmem:[%s1796_s0 + $0x10] sm:$0xff] }
   0x2   :  { %v65_v3 = vld [vmem:[%s1797_s1] sm:$0xff]  ;;  %v66_v4 = vld [vmem:[%s1797_s1 + $0x8] sm:$0xff]  ;;  %v67_v5 = vld [vmem:[%s1797_s1 + $0x10] sm:$0xff] }
   0x3   :  { %v788_v6 = vadd.f32 %v65_v3, %v17_v0  ;;  %v790_v7 = vadd.f32 %v66_v4, %v18_v1  ;;  %v792_v8 = vadd.f32 %v67_v5, %v19_v2  ;;  %v23_v9 = vld [vmem:[%s1796_s0 + $0x30] sm:$0xff]  ;;  %v24_v10 = vld [vmem:[%s1796_s0 + $0x38] sm:$0xff]  ;;  %v25_v11 = vld [vmem:[%s1796_s0 + $0x40] sm:$0xff] }
   0x4   :  { %v71_v12 = vld [vmem:[%s1797_s1 + $0x30] sm:$0xff]  ;;  %v72_v13 = vld [vmem:[%s1797_s1 + $0x38] sm:$0xff]  ;;  %v73_v14 = vld [vmem:[%s1797_s1 + $0x40] sm:$0xff] }
   0x5   :  { %v161_v15 = vadd.f32 %v790_v7, %v788_v6  ;;  %v163_v16 = vsel %vm162_vm0, %v792_v8, 0.0  ;;  %v816_v17 = vadd.f32 %v71_v12, %v23_v9  ;;  %v818_v18 = vadd.f32 %v72_v13, %v24_v10  ;;  %v20_v19 = vld [vmem:[%s1796_s0 + $0x18] sm:$0xff]  ;;  %v21_v20 = vld [vmem:[%s1796_s0 + $0x20] sm:$0xff]  ;;  %v22_v21 = vld [vmem:[%s1796_s0 + $0x28] sm:$0xff] }
   0x6   :  { %v829_v22 = vadd.f32 %v73_v14, %v25_v11  ;;  %v68_v23 = vld [vmem:[%s1797_s1 + $0x18] sm:$0xff]  ;;  %v69_v24 = vld [vmem:[%s1797_s1 + $0x20] sm:$0xff]  ;;  %v70_v25 = vld [vmem:[%s1797_s1 + $0x28] sm:$0xff] }
   0x7   :  { %v164_v26 = vadd.f32 %v163_v16, %v161_v15  ;;  %v172_v27 = vadd.f32 %v818_v18, %v816_v17  ;;  %v842_v28 = vadd.f32 %v68_v23, %v20_v19  ;;  %v844_v29 = vadd.f32 %v69_v24, %v21_v20  ;;  %v26_v30 = vld [vmem:[%s1796_s0 + $0x48] sm:$0xff]  ;;  %v27_v31 = vld [vmem:[%s1796_s0 + $0x50] sm:$0xff]  ;;  %v28_v32 = vld [vmem:[%s1796_s0 + $0x58] sm:$0xff] }
   0x8   :  { %v173_v33 = vsel %vm162_vm0, %v829_v22, 0.0  ;;  %v857_v34 = vadd.f32 %v70_v25, %v22_v21  ;;  %v74_v35 = vld [vmem:[%s1797_s1 + $0x48] sm:$0xff]  ;;  %v75_v36 = vld [vmem:[%s1797_s1 + $0x50] sm:$0xff]  ;;  %v76_v37 = vld [vmem:[%s1797_s1 + $0x58] sm:$0xff] }
   0x9   :  { %165 = vadd.xlane.f32.xlu0 %v164_v26  ;;  %v174_v38 = vadd.f32 %v173_v33, %v172_v27  ;;  %v167_v39 = vadd.f32 %v844_v29, %v842_v28  ;;  %v870_v40 = vadd.f32 %v74_v35, %v26_v30  ;;  %v872_v41 = vadd.f32 %v75_v36, %v27_v31  ;;  %v29_v42 = vld [vmem:[%s1796_s0 + $0x60] sm:$0xff]  ;;  %v30_v43 = vld [vmem:[%s1796_s0 + $0x68] sm:$0xff]  ;;  %v31_v44 = vld [vmem:[%s1796_s0 + $0x70] sm:$0xff] }
   0xa   :  { %v168_v45 = vsel %vm162_vm0, %v857_v34, 0.0  ;;  %v885_v46 = vadd.f32 %v76_v37, %v28_v32  ;;  %v77_v47 = vld [vmem:[%s1797_s1 + $0x60] sm:$0xff]  ;;  %v78_v48 = vld [vmem:[%s1797_s1 + $0x68] sm:$0xff]  ;;  %v79_v49 = vld [vmem:[%s1797_s1 + $0x70] sm:$0xff] }
   0xb   :  { %175 = vadd.xlane.f32.xlu1 %v174_v38  ;;  %v169_v50 = vadd.f32 %v168_v45, %v167_v39  ;;  %v177_v51 = vadd.f32 %v872_v41, %v870_v40  ;;  %v898_v52 = vadd.f32 %v77_v47, %v29_v42  ;;  %v900_v53 = vadd.f32 %v78_v48, %v30_v43  ;;  %v32_v54 = vld [vmem:[%s1796_s0 + $0x78] sm:$0xff]  ;;  %v33_v55 = vld [vmem:[%s1796_s0 + $0x80] sm:$0xff]  ;;  %v34_v56 = vld [vmem:[%s1796_s0 + $0x88] sm:$0xff] }
   0xc   :  { %v178_v57 = vsel %vm162_vm0, %v885_v46, 0.0  ;;  %v913_v58 = vadd.f32 %v79_v49, %v31_v44  ;;  %v80_v59 = vld [vmem:[%s1797_s1 + $0x78] sm:$0xff]  ;;  %v81_v60 = vld [vmem:[%s1797_s1 + $0x80] sm:$0xff]  ;;  %v82_v61 = vld [vmem:[%s1797_s1 + $0x88] sm:$0xff] }
   0xd   :  { %170 = vadd.xlane.f32.xlu0 %v169_v50  ;;  %v179_v62 = vadd.f32 %v178_v57, %v177_v51  ;;  %v182_v63 = vadd.f32 %v900_v53, %v898_v52  ;;  %v926_v0 = vadd.f32 %v80_v59, %v32_v54  ;;  %v928_v1 = vadd.f32 %v81_v60, %v33_v55  ;;  %v35_v2 = vld [vmem:[%s1796_s0 + $0x90] sm:$0xff]  ;;  %v36_v3 = vld [vmem:[%s1796_s0 + $0x98] sm:$0xff]  ;;  %v37_v4 = vld [vmem:[%s1796_s0 + $0xa0] sm:$0xff] }
   0xe   :  { %v183_v5 = vsel %vm162_vm0, %v913_v58, 0.0  ;;  %v941_v9 = vadd.f32 %v82_v61, %v34_v56  ;;  %v83_v10 = vld [vmem:[%s1797_s1 + $0x90] sm:$0xff]  ;;  %v84_v11 = vld [vmem:[%s1797_s1 + $0x98] sm:$0xff]  ;;  %v85_v12 = vld [vmem:[%s1797_s1 + $0xa0] sm:$0xff] }
   0xf   :  { %180 = vadd.xlane.f32.xlu1 %v179_v62  ;;  %v184_v13 = vadd.f32 %v183_v5, %v182_v63  ;;  %v187_v14 = vadd.f32 %v928_v1, %v926_v0  ;;  %v954_v15 = vadd.f32 %v83_v10, %v35_v2  ;;  %v956_v16 = vadd.f32 %v84_v11, %v36_v3  ;;  %v38_v19 = vld [vmem:[%s1796_s0 + $0xa8] sm:$0xff]  ;;  %v39_v20 = vld [vmem:[%s1796_s0 + $0xb0] sm:$0xff]  ;;  %v40_v21 = vld [vmem:[%s1796_s0 + $0xb8] sm:$0xff] }
  0x10   :  { %v188_v23 = vsel %vm162_vm0, %v941_v9, 0.0  ;;  %v969_v24 = vadd.f32 %v85_v12, %v37_v4  ;;  %v86_v25 = vld [vmem:[%s1797_s1 + $0xa8] sm:$0xff]  ;;  %v87_v26 = vld [vmem:[%s1797_s1 + $0xb0] sm:$0xff]  ;;  %v88_v27 = vld [vmem:[%s1797_s1 + $0xb8] sm:$0xff] }
  0x11   :  { %185 = vadd.xlane.f32.xlu0 %v184_v13  ;;  %v189_v30 = vadd.f32 %v188_v23, %v187_v14  ;;  %v192_v31 = vadd.f32 %v956_v16, %v954_v15  ;;  %v982_v32 = vadd.f32 %v86_v25, %v38_v19  ;;  %v984_v33 = vadd.f32 %v87_v26, %v39_v20  ;;  %v41_v35 = vld [vmem:[%s1796_s0 + $0xc0] sm:$0xff]  ;;  %v42_v36 = vld [vmem:[%s1796_s0 + $0xc8] sm:$0xff]  ;;  %v43_v37 = vld [vmem:[%s1796_s0 + $0xd0] sm:$0xff] }
  0x12   :  { %v193_v38 = vsel %vm162_vm0, %v969_v24, 0.0  ;;  %v997_v39 = vadd.f32 %v88_v27, %v40_v21  ;;  %v89_v42 = vld [vmem:[%s1797_s1 + $0xc0] sm:$0xff]  ;;  %v90_v43 = vld [vmem:[%s1797_s1 + $0xc8] sm:$0xff]  ;;  %v91_v44 = vld [vmem:[%s1797_s1 + $0xd0] sm:$0xff] }
  0x13   :  { %190 = vadd.xlane.f32.xlu1 %v189_v30  ;;  %v194_v45 = vadd.f32 %v193_v38, %v192_v31  ;;  %v197_v47 = vadd.f32 %v984_v33, %v982_v32  ;;  %v1010_v48 = vadd.f32 %v89_v42, %v41_v35  ;;  %v1012_v49 = vadd.f32 %v90_v43, %v42_v36  ;;  %v44_v50 = vld [vmem:[%s1796_s0 + $0xd8] sm:$0xff]  ;;  %v45_v51 = vld [vmem:[%s1796_s0 + $0xe0] sm:$0xff]  ;;  %v46_v54 = vld [vmem:[%s1796_s0 + $0xe8] sm:$0xff] }
  0x14   :  { %v198_v55 = vsel %vm162_vm0, %v997_v39, 0.0  ;;  %v1025_v56 = vadd.f32 %v91_v44, %v43_v37  ;;  %v92_v57 = vld [vmem:[%s1797_s1 + $0xd8] sm:$0xff]  ;;  %v93_v59 = vld [vmem:[%s1797_s1 + $0xe0] sm:$0xff]  ;;  %v94_v60 = vld [vmem:[%s1797_s1 + $0xe8] sm:$0xff] }
  0x15   :  { %195 = vadd.xlane.f32.xlu0 %v194_v45  ;;  %v199_v61 = vadd.f32 %v198_v55, %v197_v47  ;;  %v202_v62 = vadd.f32 %v1012_v49, %v1010_v48  ;;  %v1038_v63 = vadd.f32 %v92_v57, %v44_v50  ;;  %v1040_v2 = vadd.f32 %v93_v59, %v45_v51  ;;  %v47_v3 = vld [vmem:[%s1796_s0 + $0xf0] sm:$0xff]  ;;  %v48_v4 = vld [vmem:[%s1796_s0 + $0xf8] sm:$0xff]  ;;  %v49_v5 = vld [vmem:[%s1796_s0 + $0x100] sm:$0xff] }
  0x16   :  { %v203_v10 = vsel %vm162_vm0, %v1025_v56, 0.0  ;;  %v1053_v11 = vadd.f32 %v94_v60, %v46_v54  ;;  %v95_v12 = vld [vmem:[%s1797_s1 + $0xf0] sm:$0xff]  ;;  %v96_v13 = vld [vmem:[%s1797_s1 + $0xf8] sm:$0xff]  ;;  %v97_v14 = vld [vmem:[%s1797_s1 + $0x100] sm:$0xff] }
  0x17   :  { %200 = vadd.xlane.f32.xlu1 %v199_v61  ;;  %v204_v19 = vadd.f32 %v203_v10, %v202_v62  ;;  %v207_v20 = vadd.f32 %v1040_v2, %v1038_v63  ;;  %v1066_v21 = vadd.f32 %v95_v12, %v47_v3  ;;  %v1068_v23 = vadd.f32 %v96_v13, %v48_v4  ;;  %v50_v25 = vld [vmem:[%s1796_s0 + $0x108] sm:$0xff]  ;;  %v51_v26 = vld [vmem:[%s1796_s0 + $0x110] sm:$0xff]  ;;  %v52_v27 = vld [vmem:[%s1796_s0 + $0x118] sm:$0xff] }
  0x18   :  { %v208_v30 = vsel %vm162_vm0, %v1053_v11, 0.0  ;;  %v1081_v31 = vadd.f32 %v97_v14, %v49_v5  ;;  %v98_v35 = vld [vmem:[%s1797_s1 + $0x108] sm:$0xff]  ;;  %v99_v36 = vld [vmem:[%s1797_s1 + $0x110] sm:$0xff]  ;;  %v100_v37 = vld [vmem:[%s1797_s1 + $0x118] sm:$0xff] }
  0x19   :  { %205 = vadd.xlane.f32.xlu0 %v204_v19  ;;  %v209_v38 = vadd.f32 %v208_v30, %v207_v20  ;;  %v212_v42 = vadd.f32 %v1068_v23, %v1066_v21  ;;  %v1094_v43 = vadd.f32 %v98_v35, %v50_v25  ;;  %v1096_v44 = vadd.f32 %v99_v36, %v51_v26  ;;  %v53_v45 = vld [vmem:[%s1796_s0 + $0x120] sm:$0xff]  ;;  %v54_v47 = vld [vmem:[%s1796_s0 + $0x128] sm:$0xff]  ;;  %v55_v50 = vld [vmem:[%s1796_s0 + $0x130] sm:$0xff] }
  0x1a   :  { %v213_v51 = vsel %vm162_vm0, %v1081_v31, 0.0  ;;  %v1109_v54 = vadd.f32 %v100_v37, %v52_v27  ;;  %v101_v55 = vld [vmem:[%s1797_s1 + $0x120] sm:$0xff]  ;;  %v102_v57 = vld [vmem:[%s1797_s1 + $0x128] sm:$0xff]  ;;  %v103_v59 = vld [vmem:[%s1797_s1 + $0x130] sm:$0xff] }
  0x1b   :  { %210 = vadd.xlane.f32.xlu1 %v209_v38  ;;  %v214_v60 = vadd.f32 %v213_v51, %v212_v42  ;;  %v217_v61 = vadd.f32 %v1096_v44, %v1094_v43  ;;  %v1122_v62 = vadd.f32 %v101_v55, %v53_v45  ;;  %v1124_v3 = vadd.f32 %v102_v57, %v54_v47  ;;  %v56_v4 = vld [vmem:[%s1796_s0 + $0x138] sm:$0xff]  ;;  %v57_v5 = vld [vmem:[%s1796_s0 + $0x140] sm:$0xff]  ;;  %v58_v10 = vld [vmem:[%s1796_s0 + $0x148] sm:$0xff] }
  0x1c   :  { %v218_v12 = vsel %vm162_vm0, %v1109_v54, 0.0  ;;  %v1137_v13 = vadd.f32 %v103_v59, %v55_v50  ;;  %v104_v14 = vld [vmem:[%s1797_s1 + $0x138] sm:$0xff]  ;;  %v105_v19 = vld [vmem:[%s1797_s1 + $0x140] sm:$0xff]  ;;  %v106_v20 = vld [vmem:[%s1797_s1 + $0x148] sm:$0xff] }
  0x1d   :  { %215 = vadd.xlane.f32.xlu0 %v214_v60  ;;  %v219_v25 = vadd.f32 %v218_v12, %v217_v61  ;;  %v222_v26 = vadd.f32 %v1124_v3, %v1122_v62  ;;  %v1150_v27 = vadd.f32 %v104_v14, %v56_v4  ;;  %v1152_v30 = vadd.f32 %v105_v19, %v57_v5  ;;  %v59_v35 = vld [vmem:[%s1796_s0 + $0x150] sm:$0xff]  ;;  %v60_v36 = vld [vmem:[%s1796_s0 + $0x158] sm:$0xff]  ;;  %v61_v37 = vld [vmem:[%s1796_s0 + $0x160] sm:$0xff] }
  0x1e   :  { %v223_v38 = vsel %vm162_vm0, %v1137_v13, 0.0  ;;  %v1165_v42 = vadd.f32 %v106_v20, %v58_v10  ;;  %v107_v45 = vld [vmem:[%s1797_s1 + $0x150] sm:$0xff]  ;;  %v108_v47 = vld [vmem:[%s1797_s1 + $0x158] sm:$0xff]  ;;  %v109_v50 = vld [vmem:[%s1797_s1 + $0x160] sm:$0xff] }
  0x1f   :  { %220 = vadd.xlane.f32.xlu1 %v219_v25  ;;  %v224_v51 = vadd.f32 %v223_v38, %v222_v26  ;;  %v227_v55 = vadd.f32 %v1152_v30, %v1150_v27  ;;  %v1178_v57 = vadd.f32 %v107_v45, %v59_v35  ;;  %v1180_v59 = vadd.f32 %v108_v47, %v60_v36  ;;  %v62_v60 = vld [vmem:[%s1796_s0 + $0x168] sm:$0xff]  ;;  %v63_v61 = vld [vmem:[%s1796_s0 + $0x170] sm:$0xff]  ;;  %v64_v4 = vld [vmem:[%s1796_s0 + $0x178] sm:$0xff] }
  0x20   :  { %v228_v5 = vsel %vm162_vm0, %v1165_v42, 0.0  ;;  %v1193_v10 = vadd.f32 %v109_v50, %v61_v37  ;;  %v110_v12 = vld [vmem:[%s1797_s1 + $0x168] sm:$0xff]  ;;  %v111_v14 = vld [vmem:[%s1797_s1 + $0x170] sm:$0xff]  ;;  %v112_v19 = vld [vmem:[%s1797_s1 + $0x178] sm:$0xff] }
  0x21   :  { %225 = vadd.xlane.f32.xlu0 %v224_v51  ;;  %v229_v20 = vadd.f32 %v228_v5, %v227_v55  ;;  %v232_v25 = vadd.f32 %v1180_v59, %v1178_v57  ;;  %v1206_v26 = vadd.f32 %v110_v12, %v62_v60  ;;  %v1208_v35 = vadd.f32 %v111_v14, %v63_v61 }
  0x22   :  { %v233_v36 = vsel %vm162_vm0, %v1193_v10, 0.0  ;;  %v1212_v37 = vadd.f32 %v112_v19, %v64_v4 }
  0x23   :  { %230 = vadd.xlane.f32.xlu1 %v229_v20  ;;  %v234_v38 = vadd.f32 %v233_v36, %v232_v25  ;;  %v237_v45 = vadd.f32 %v1208_v35, %v1206_v26 }
  0x24   :  { %v238_v47 = vsel %vm162_vm0, %v1212_v37, 0.0 }
  0x25   :  { %235 = vadd.xlane.f32.xlu0 %v234_v38  ;;  %v239_v50 = vadd.f32 %v238_v47, %v237_v45 }
  0x27   :  { %240 = vadd.xlane.f32.xlu1 %v239_v50 }
  0x96   :  { %v166_v51 = vpop.xlane.xlu0 %165 }
  0x97   :  { %v243_v55 = vmul.f32 0.0028571428, %v166_v51 }
  0x98   :  { %v176_v60 = vpop.xlane.xlu1 %175 }
  0x99   :  { %v1219_v61 = vsub.f32 %v788_v6, %v243_v55  ;;  %v1222_v4 = vsub.f32 %v790_v7, %v243_v55  ;;  %v1225_v5 = vsub.f32 %v792_v8, %v243_v55  ;;  %v245_v12 = vmul.f32 0.0028571428, %v176_v60 }
  0x9a   :  { %v171_v14 = vpop.xlane.xlu0 %170 }
  0x9b   :  { %v1228_v19 = vsub.f32 %v816_v17, %v245_v12  ;;  %v1231_v20 = vsub.f32 %v818_v18, %v245_v12  ;;  %v244_v25 = vmul.f32 0.0028571428, %v171_v14  ;;  %v1234_v36 = vsub.f32 %v829_v22, %v245_v12 }
  0x9c   :  { %v181_v6 = vpop.xlane.xlu1 %180  ;;  %v307_v7 = vmul.f32 %v1219_v61, %v1219_v61  ;;  %v308_v8 = vmul.f32 %v1222_v4, %v1222_v4  ;;  %v309_v38 = vmul.f32 %v1225_v5, %v1225_v5 }
  0x9d   :  { %v1243_v17 = vsub.f32 %v842_v28, %v244_v25  ;;  %v1246_v18 = vsub.f32 %v844_v29, %v244_v25  ;;  %v1249_v45 = vsub.f32 %v857_v34, %v244_v25  ;;  %v246_v22 = vmul.f32 0.0028571428, %v181_v6 }
  0x9e   :  { %v186_v47 = vpop.xlane.xlu0 %185  ;;  %v355_v50 = vadd.f32 %v308_v8, %v307_v7  ;;  %v356_v51 = vsel %vm162_vm0, %v309_v38, 0.0  ;;  %v313_v55 = vmul.f32 %v1228_v19, %v1228_v19  ;;  %v314_v60 = vmul.f32 %v1231_v20, %v1231_v20 }
  0x9f   :  { %1807 = vst [vmem:[#allocation2_spill] sm:$0xff] %v1249_v45  ;;  %v1257_v28 = vsub.f32 %v870_v40, %v246_v22  ;;  %v1260_v29 = vsub.f32 %v872_v41, %v246_v22  ;;  %v1263_v34 = vsub.f32 %v885_v46, %v246_v22  ;;  %v247_v12 = vmul.f32 0.0028571428, %v186_v47 }
  0xa0   :  { %v191_v14 = vpop.xlane.xlu1 %190  ;;  %v357_v25 = vadd.f32 %v356_v51, %v355_v50  ;;  %v315_v6 = vmul.f32 %v1234_v36, %v1234_v36  ;;  %v365_v7 = vadd.f32 %v314_v60, %v313_v55  ;;  %v310_v8 = vmul.f32 %v1243_v17, %v1243_v17 }
  0xa1   :  { %1808 = vst [vmem:[#allocation3_spill] sm:$0xff] %v1257_v28  ;;  %v1270_v38 = vsub.f32 %v898_v52, %v247_v12  ;;  %v1273_v40 = vsub.f32 %v900_v53, %v247_v12  ;;  %v1276_v41 = vsub.f32 %v913_v58, %v247_v12  ;;  %v248_v46 = vmul.f32 0.0028571428, %v191_v14 }
  0xa2   :  { %358 = vadd.xlane.f32.xlu0 %v357_v25  ;;  %v196_v22 = vpop.xlane.xlu0 %195  ;;  %v366_v47 = vsel %vm162_vm0, %v315_v6, 0.0  ;;  %v311_v50 = vmul.f32 %v1246_v18, %v1246_v18  ;;  %v312_v51 = vmul.f32 %v1249_v45, %v1249_v45  ;;  %v316_v52 = vmul.f32 %v1257_v28, %v1257_v28 }
  0xa3   :  { %v1286_v53 = vsub.f32 %v926_v0, %v248_v46  ;;  %v1289_v58 = vsub.f32 %v928_v1, %v248_v46  ;;  %v1292_v55 = vsub.f32 %v941_v9, %v248_v46  ;;  %v249_v60 = vmul.f32 0.0028571428, %v196_v22 }
  0xa4   :  { %v201_v12 = vpop.xlane.xlu1 %200  ;;  %v367_v14 = vadd.f32 %v366_v47, %v365_v7  ;;  %v360_v25 = vadd.f32 %v311_v50, %v310_v8  ;;  %v361_v6 = vsel %vm162_vm0, %v312_v51, 0.0  ;;  %v317_v45 = vmul.f32 %v1260_v29, %v1260_v29 }
  0xa5   :  { %v1298_v28 = vsub.f32 %v954_v15, %v249_v60  ;;  %v1301_v0 = vsub.f32 %v956_v16, %v249_v60  ;;  %v1304_v1 = vsub.f32 %v969_v24, %v249_v60  ;;  %v250_v9 = vmul.f32 0.0028571428, %v201_v12 }
  0xa6   :  { %368 = vadd.xlane.f32.xlu0 %v367_v14  ;;  %v362_v46 = vadd.f32 %v361_v6, %v360_v25  ;;  %v206_v22 = vpop.xlane.xlu0 %205  ;;  %v318_v7 = vmul.f32 %v1263_v34, %v1263_v34  ;;  %v370_v8 = vadd.f32 %v317_v45, %v316_v52  ;;  %v319_v47 = vmul.f32 %v1270_v38, %v1270_v38 }
  0xa7   :  { %v1311_v15 = vsub.f32 %v982_v32, %v250_v9  ;;  %v1314_v16 = vsub.f32 %v984_v33, %v250_v9  ;;  %v1317_v24 = vsub.f32 %v997_v39, %v250_v9  ;;  %v251_v50 = vmul.f32 0.0028571428, %v206_v22 }
  0xa8   :  { %363 = vadd.xlane.f32.xlu1 %v362_v46  ;;  %v211_v51 = vpop.xlane.xlu1 %210  ;;  %v371_v60 = vsel %vm162_vm0, %v318_v7, 0.0  ;;  %v320_v45 = vmul.f32 %v1273_v40, %v1273_v40  ;;  %v321_v52 = vmul.f32 %v1276_v41, %v1276_v41  ;;  %v322_v32 = vmul.f32 %v1286_v53, %v1286_v53 }
  0xa9   :  { %v1327_v33 = vsub.f32 %v1010_v48, %v251_v50  ;;  %v1330_v39 = vsub.f32 %v1012_v49, %v251_v50  ;;  %v1333_v12 = vsub.f32 %v1025_v56, %v251_v50  ;;  %v252_v14 = vmul.f32 0.0028571428, %v211_v51 }
  0xaa   :  { %v372_v25 = vadd.f32 %v371_v60, %v370_v8  ;;  %v375_v6 = vadd.f32 %v320_v45, %v319_v47  ;;  %v376_v9 = vsel %vm162_vm0, %v321_v52, 0.0  ;;  %v216_v46 = vpop.xlane.xlu0 %215  ;;  %v323_v22 = vmul.f32 %v1289_v58, %v1289_v58 }
  0xab   :  { %1809 = vst [vmem:[#allocation4_spill] sm:$0xff] %v1330_v39  ;;  %v1339_v7 = vsub.f32 %v1038_v63, %v252_v14  ;;  %v1342_v48 = vsub.f32 %v1040_v2, %v252_v14  ;;  %v1345_v49 = vsub.f32 %v1053_v11, %v252_v14  ;;  %v253_v56 = vmul.f32 0.0028571428, %v216_v46 }
  0xac   :  { %373 = vadd.xlane.f32.xlu1 %v372_v25  ;;  %v377_v50 = vadd.f32 %v376_v9, %v375_v6  ;;  %v221_v8 = vpop.xlane.xlu1 %220  ;;  %v324_v47 = vmul.f32 %v1292_v55, %v1292_v55  ;;  %v380_v51 = vadd.f32 %v323_v22, %v322_v32  ;;  %v325_v60 = vmul.f32 %v1298_v28, %v1298_v28 }
  0xad   :  { %v1352_v63 = vsub.f32 %v1066_v21, %v253_v56  ;;  %v1355_v2 = vsub.f32 %v1068_v23, %v253_v56  ;;  %v1358_v11 = vsub.f32 %v1081_v31, %v253_v56  ;;  %v254_v45 = vmul.f32 0.0028571428, %v221_v8 }
  0xae   :  { %378 = vadd.xlane.f32.xlu0 %v377_v50  ;;  %v381_v52 = vsel %vm162_vm0, %v324_v47, 0.0  ;;  %v326_v14 = vmul.f32 %v1301_v0, %v1301_v0  ;;  %v327_v32 = vmul.f32 %v1304_v1, %v1304_v1  ;;  %v226_v25 = vpop.xlane.xlu0 %225  ;;  %v328_v21 = vmul.f32 %v1311_v15, %v1311_v15 }
  0xaf   :  { %v1368_v23 = vsub.f32 %v1094_v43, %v254_v45  ;;  %v1371_v31 = vsub.f32 %v1096_v44, %v254_v45  ;;  %v1374_v6 = vsub.f32 %v1109_v54, %v254_v45  ;;  %v382_v9 = vadd.f32 %v381_v52, %v380_v51 }
  0xb0   :  { %v385_v46 = vadd.f32 %v326_v14, %v325_v60  ;;  %v386_v22 = vsel %vm162_vm0, %v327_v32, 0.0  ;;  %v255_v56 = vmul.f32 0.0028571428, %v226_v25  ;;  %v231_v50 = vpop.xlane.xlu1 %230  ;;  %v329_v8 = vmul.f32 %v1314_v16, %v1314_v16 }
  0xb1   :  { %383 = vadd.xlane.f32.xlu1 %v382_v9  ;;  %v256_v47 = vmul.f32 0.0028571428, %v231_v50  ;;  %v330_v43 = vmul.f32 %v1317_v24, %v1317_v24  ;;  %v331_v44 = vmul.f32 %v1327_v33, %v1327_v33  ;;  %v332_v54 = vmul.f32 %v1330_v39, %v1330_v39 }
  0xb2   :  { %v387_v51 = vadd.f32 %v386_v22, %v385_v46  ;;  %v1386_v60 = vsub.f32 %v1122_v62, %v255_v56  ;;  %v1389_v45 = vsub.f32 %v1124_v3, %v255_v56  ;;  %v1392_v52 = vsub.f32 %v1137_v13, %v255_v56  ;;  %v236_v14 = vpop.xlane.xlu0 %235 }
  0xb3   :  { %v1395_v32 = vsub.f32 %v1150_v27, %v256_v47  ;;  %v1398_v25 = vsub.f32 %v1152_v30, %v256_v47  ;;  %v1401_v9 = vsub.f32 %v1165_v42, %v256_v47  ;;  %v390_v46 = vadd.f32 %v329_v8, %v328_v21 }
  0xb4   :  { %388 = vadd.xlane.f32.xlu0 %v387_v51  ;;  %v391_v62 = vsel %vm162_vm0, %v330_v43, 0.0  ;;  %v333_v3 = vmul.f32 %v1333_v12, %v1333_v12  ;;  %v395_v22 = vadd.f32 %v332_v54, %v331_v44  ;;  %v257_v13 = vmul.f32 0.0028571428, %v236_v14  ;;  %v241_v56 = vpop.xlane.xlu1 %240 }
  0xb5   :  { %v392_v50 = vadd.f32 %v391_v62, %v390_v46  ;;  %v258_v39 = vmul.f32 0.0028571428, %v241_v56  ;;  %v334_v27 = vmul.f32 %v1339_v7, %v1339_v7  ;;  %v335_v30 = vmul.f32 %v1342_v48, %v1342_v48 }
  0xb6   :  { %v396_v42 = vsel %vm162_vm0, %v333_v3, 0.0  ;;  %v1412_v21 = vsub.f32 %v1178_v57, %v257_v13  ;;  %v1415_v8 = vsub.f32 %v1180_v59, %v257_v13  ;;  %v1418_v47 = vsub.f32 %v1193_v10, %v257_v13 }
  0xb7   :  { %393 = vadd.xlane.f32.xlu1 %v392_v50  ;;  %v397_v43 = vadd.f32 %v396_v42, %v395_v22  ;;  %v1421_v44 = vsub.f32 %v1206_v26, %v258_v39  ;;  %v1424_v54 = vsub.f32 %v1208_v35, %v258_v39  ;;  %v1427_v51 = vsub.f32 %v1212_v37, %v258_v39 }
  0xb8   :  { %1810 = vst [vmem:[#allocation5_spill] sm:$0xff] %v1418_v47  ;;  %v336_v57 = vmul.f32 %v1345_v49, %v1345_v49  ;;  %v400_v14 = vadd.f32 %v335_v30, %v334_v27  ;;  %v337_v59 = vmul.f32 %v1352_v63, %v1352_v63  ;;  %v338_v10 = vmul.f32 %v1355_v2, %v1355_v2 }
  0xb9   :  { %1811 = vst [vmem:[#allocation6_spill] sm:$0xff] %v1421_v44  ;;  %1812 = vst [vmem:[#allocation7_spill] sm:$0xff] %v1427_v51  ;;  %398 = vadd.xlane.f32.xlu0 %v397_v43  ;;  %v339_v26 = vmul.f32 %v1358_v11, %v1358_v11  ;;  %v340_v35 = vmul.f32 %v1368_v23, %v1368_v23  ;;  %v341_v37 = vmul.f32 %v1371_v31, %v1371_v31 }
  0xba   :  { %v342_v39 = vmul.f32 %v1374_v6, %v1374_v6  ;;  %v401_v46 = vsel %vm162_vm0, %v336_v57, 0.0  ;;  %v405_v62 = vadd.f32 %v338_v10, %v337_v59  ;;  %v343_v3 = vmul.f32 %v1386_v60, %v1386_v60 }
  0xbb   :  { %v344_v22 = vmul.f32 %v1389_v45, %v1389_v45  ;;  %v402_v13 = vadd.f32 %v401_v46, %v400_v14  ;;  %v406_v56 = vsel %vm162_vm0, %v339_v26, 0.0  ;;  %v410_v50 = vadd.f32 %v341_v37, %v340_v35 }
  0xbc   :  { %v411_v27 = vsel %vm162_vm0, %v342_v39, 0.0  ;;  %v407_v30 = vadd.f32 %v406_v56, %v405_v62  ;;  %v345_v42 = vmul.f32 %v1392_v52, %v1392_v52  ;;  %v346_v57 = vmul.f32 %v1395_v32, %v1395_v32 }
  0xbd   :  { %v415_v43 = vadd.f32 %v344_v22, %v343_v3  ;;  %403 = vadd.xlane.f32.xlu1 %v402_v13  ;;  %v412_v59 = vadd.f32 %v411_v27, %v410_v50  ;;  %v347_v10 = vmul.f32 %v1398_v25, %v1398_v25  ;;  %v348_v14 = vmul.f32 %v1401_v9, %v1401_v9 }
  0xbe   :  { %v349_v26 = vmul.f32 %v1412_v21, %v1412_v21  ;;  %408 = vadd.xlane.f32.xlu0 %v407_v30  ;;  %v416_v35 = vsel %vm162_vm0, %v345_v42, 0.0  ;;  %v350_v37 = vmul.f32 %v1415_v8, %v1415_v8  ;;  %v351_v39 = vmul.f32 %v1418_v47, %v1418_v47 }
  0xbf   :  { %v352_v46 = vmul.f32 %v1421_v44, %v1421_v44  ;;  %v417_v62 = vadd.f32 %v416_v35, %v415_v43  ;;  %v420_v3 = vadd.f32 %v347_v10, %v346_v57  ;;  %v421_v22 = vsel %vm162_vm0, %v348_v14, 0.0 }
  0xc0   :  { %v353_v13 = vmul.f32 %v1424_v54, %v1424_v54  ;;  %v425_v56 = vadd.f32 %v350_v37, %v349_v26  ;;  %v426_v50 = vsel %vm162_vm0, %v351_v39, 0.0  ;;  %v354_v27 = vmul.f32 %v1427_v51, %v1427_v51 }
  0xc1   :  { %413 = vadd.xlane.f32.xlu1 %v412_v59  ;;  %v422_v30 = vadd.f32 %v421_v22, %v420_v3  ;;  %v533_v14 = vlaneseq }
  0xc2   :  { %v430_v42 = vadd.f32 %v353_v13, %v352_v46  ;;  %418 = vadd.xlane.f32.xlu0 %v417_v62  ;;  %v427_v47 = vadd.f32 %v426_v50, %v425_v56  ;;  %v431_v44 = vsel %vm162_vm0, %v354_v27, 0.0 }
  0xc3   :  { %v534_v39 = vshrl.u32 %v533_v14, 7 }
  0xc4   :  { %v432_v43 = vadd.f32 %v431_v44, %v430_v42  ;;  %v596_v44 = vld [vmem:[%s1799_s3] sm:$0x7] }
  0xc5   :  { %423 = vadd.xlane.f32.xlu1 %v422_v30  ;;  %v535_v62 = vsub.s32 0, %v534_v39  ;;  %v539_v22 = vsub.s32 1, %v534_v39  ;;  %v543_v13 = vsub.s32 2, %v534_v39 }
  0xc6   :  { %428 = vadd.xlane.f32.xlu0 %v427_v47  ;;  %v531_v47 = vld [vmem:[%s1798_s2] sm:$0x7] }
  0xc7   :  { %v1480_v42 = vrot.slane %v531_v47, %v535_v62 }
  0xc9   :  { %433 = vadd.xlane.f32.xlu1 %v432_v43  ;;  %v1482_v43 = vrot.slane %v531_v47, %v539_v22 }
 0x12f   :  { %v359_v57 = vpop.xlane.xlu0 %358 }
 0x130   :  { %v435_v10 = vmul.f32 0.0028571428, %v359_v57  ;;  %v1484_v57 = vrot.slane %v531_v47, %v543_v13 }
 0x132   :  { %v451_v26 = vadd.f32 1e-05, %v435_v10  ;;  %v1486_v10 = vrot.slane %v596_v44, %v535_v62 }
 0x133   :  { %v369_v35 = vpop.xlane.xlu0 %368 }
 0x134   :  { %713 = vrsqrt.f32 %v451_v26  ;;  %v437_v37 = vmul.f32 0.0028571428, %v369_v35  ;;  %v1488_v26 = vrot.slane %v596_v44, %v539_v22  ;;  %v1490_v35 = vrot.slane %v596_v44, %v543_v13 }
 0x135   :  { %v364_v51 = vpop.xlane.xlu1 %363 }
 0x136   :  { %v436_v59 = vmul.f32 0.0028571428, %v364_v51  ;;  %v453_v3 = vadd.f32 1e-05, %v437_v37 }
 0x138   :  { %v452_v46 = vadd.f32 1e-05, %v436_v59  ;;  %715 = vrsqrt.f32 %v453_v3 }
 0x139   :  { %v374_v56 = vpop.xlane.xlu1 %373 }
 0x13a   :  { %717 = vrsqrt.f32 %v452_v46  ;;  %v438_v50 = vmul.f32 0.0028571428, %v374_v56 }
 0x13b   :  { %v379_v27 = vpop.xlane.xlu0 %378 }
 0x13c   :  { %v454_v30 = vadd.f32 1e-05, %v438_v50  ;;  %v439_v51 = vmul.f32 0.0028571428, %v379_v27 }
 0x13e   :  { %v714_v14 = vpop.eup %713  ;;  %719 = vrsqrt.f32 %v454_v30  ;;  %v455_v37 = vadd.f32 1e-05, %v439_v51  ;;  %v384_v39 = vpop.xlane.xlu1 %383 }
 0x13f   :  { %v483_v59 = vmul.f32 %v714_v14, %v1219_v61  ;;  %v484_v3 = vmul.f32 %v714_v14, %v1222_v4  ;;  %v485_v46 = vmul.f32 %v714_v14, %v1225_v5  ;;  %v440_v56 = vmul.f32 0.0028571428, %v384_v39 }
 0x140   :  { %721 = vrsqrt.f32 %v455_v37 }
 0x141   :  { %v548_v47 = vmul.f32 %v1480_v42, %v483_v59  ;;  %v549_v62 = vmul.f32 %v1482_v43, %v484_v3  ;;  %v550_v22 = vmul.f32 %v1484_v57, %v485_v46  ;;  %v456_v50 = vadd.f32 1e-05, %v440_v56  ;;  %v389_v13 = vpop.xlane.xlu0 %388 }
 0x142   :  { %v716_v44 = vpop.eup %715  ;;  %v441_v27 = vmul.f32 0.0028571428, %v389_v13 }
 0x143   :  { %v613_v30 = vadd.f32 %v1486_v10, %v548_v47  ;;  %v614_v61 = vadd.f32 %v1488_v26, %v549_v62  ;;  %v615_v4 = vadd.f32 %v1490_v35, %v550_v22  ;;  %v489_v5 = vmul.f32 %v716_v44, %v1228_v19 }
 0x144   :  { %v718_v51 = vpop.eup %717  ;;  %v490_v14 = vmul.f32 %v716_v44, %v1231_v20  ;;  %v491_v37 = vmul.f32 %v716_v44, %v1234_v36  ;;  %723 = vrsqrt.f32 %v456_v50  ;;  %v457_v39 = vadd.f32 1e-05, %v441_v27  ;;  %v394_v59 = vpop.xlane.xlu1 %393  ;;  %v1813_v36 = vld [vmem:[#allocation2_spill] sm:$0xff] }
 0x145   :  { %661 = vst [vmem:[%s1800_s4] sm:$0xff] %v613_v30  ;;  %662 = vst [vmem:[%s1800_s4 + $0x8] sm:$0xff] %v614_v61  ;;  %v486_v19 = vmul.f32 %v718_v51, %v1243_v17  ;;  %v487_v20 = vmul.f32 %v718_v51, %v1246_v18  ;;  %v488_v3 = vmul.f32 %v718_v51, %v1813_v36  ;;  %v442_v62 = vmul.f32 0.0028571428, %v394_v59 }
 0x146   :  { %663 = vst.msk [vmem:[%s1800_s4 + $0x10] sm:$0xff] %vm162_vm0, %v615_v4  ;;  %v554_v46 = vmul.f32 %v1480_v42, %v489_v5  ;;  %v555_v56 = vmul.f32 %v1482_v43, %v490_v14  ;;  %v556_v47 = vmul.f32 %v1484_v57, %v491_v37  ;;  %725 = vrsqrt.f32 %v457_v39  ;;  %v399_v22 = vpop.xlane.xlu0 %398  ;;  %v1814_v37 = vld [vmem:[#allocation3_spill] sm:$0xff] }
 0x147   :  { %v551_v50 = vmul.f32 %v1480_v42, %v486_v19  ;;  %v552_v13 = vmul.f32 %v1482_v43, %v487_v20  ;;  %v553_v44 = vmul.f32 %v1484_v57, %v488_v3  ;;  %v458_v61 = vadd.f32 1e-05, %v442_v62 }
 0x148   :  { %v619_v17 = vadd.f32 %v1486_v10, %v554_v46  ;;  %v720_v18 = vpop.eup %719  ;;  %v620_v27 = vadd.f32 %v1488_v26, %v555_v56  ;;  %v621_v30 = vadd.f32 %v1490_v35, %v556_v47  ;;  %v443_v4 = vmul.f32 0.0028571428, %v399_v22 }
 0x149   :  { %v616_v5 = vadd.f32 %v1486_v10, %v551_v50  ;;  %v617_v51 = vadd.f32 %v1488_v26, %v552_v13  ;;  %v618_v14 = vadd.f32 %v1490_v35, %v553_v44  ;;  %v492_v39 = vmul.f32 %v720_v18, %v1814_v37 }
 0x14a   :  { %667 = vst [vmem:[%s1800_s4 + $0x30] sm:$0xff] %v619_v17  ;;  %v722_v59 = vpop.eup %721  ;;  %668 = vst [vmem:[%s1800_s4 + $0x38] sm:$0xff] %v620_v27  ;;  %v493_v19 = vmul.f32 %v720_v18, %v1260_v29  ;;  %v494_v20 = vmul.f32 %v720_v18, %v1263_v34  ;;  %727 = vrsqrt.f32 %v458_v61  ;;  %v459_v36 = vadd.f32 1e-05, %v443_v4  ;;  %v404_v3 = vpop.xlane.xlu1 %403 }
 0x14b   :  { %669 = vst.msk [vmem:[%s1800_s4 + $0x40] sm:$0xff] %vm162_vm0, %v621_v30  ;;  %664 = vst [vmem:[%s1800_s4 + $0x18] sm:$0xff] %v616_v5  ;;  %v557_v29 = vmul.f32 %v1480_v42, %v492_v39  ;;  %v495_v34 = vmul.f32 %v722_v59, %v1270_v38  ;;  %v496_v46 = vmul.f32 %v722_v59, %v1273_v40  ;;  %v409_v47 = vpop.xlane.xlu0 %408  ;;  %v444_v50 = vmul.f32 0.0028571428, %v404_v3 }
 0x14c   :  { %665 = vst [vmem:[%s1800_s4 + $0x20] sm:$0xff] %v617_v51  ;;  %666 = vst.msk [vmem:[%s1800_s4 + $0x28] sm:$0xff] %vm162_vm0, %v618_v14  ;;  %v497_v56 = vmul.f32 %v722_v59, %v1276_v41  ;;  %v558_v62 = vmul.f32 %v1482_v43, %v493_v19  ;;  %v559_v22 = vmul.f32 %v1484_v57, %v494_v20  ;;  %729 = vrsqrt.f32 %v459_v36 }
 0x14d   :  { %v622_v13 = vadd.f32 %v1486_v10, %v557_v29  ;;  %v560_v44 = vmul.f32 %v1480_v42, %v495_v34  ;;  %v561_v17 = vmul.f32 %v1482_v43, %v496_v46  ;;  %v460_v27 = vadd.f32 1e-05, %v444_v50 }
 0x14e   :  { %v562_v18 = vmul.f32 %v1484_v57, %v497_v56  ;;  %v724_v38 = vpop.eup %723  ;;  %v623_v40 = vadd.f32 %v1488_v26, %v558_v62  ;;  %v624_v41 = vadd.f32 %v1490_v35, %v559_v22  ;;  %v445_v30 = vmul.f32 0.0028571428, %v409_v47  ;;  %v414_v14 = vpop.xlane.xlu1 %413 }
 0x14f   :  { %670 = vst [vmem:[%s1800_s4 + $0x48] sm:$0xff] %v622_v13  ;;  %v625_v61 = vadd.f32 %v1486_v10, %v560_v44  ;;  %v626_v4 = vadd.f32 %v1488_v26, %v561_v17  ;;  %v498_v51 = vmul.f32 %v724_v38, %v1286_v53  ;;  %v499_v39 = vmul.f32 %v724_v38, %v1289_v58  ;;  %v419_v36 = vpop.xlane.xlu0 %418 }
 0x150   :  { %v627_v5 = vadd.f32 %v1490_v35, %v562_v18  ;;  %v726_v37 = vpop.eup %725  ;;  %671 = vst [vmem:[%s1800_s4 + $0x50] sm:$0xff] %v623_v40  ;;  %672 = vst.msk [vmem:[%s1800_s4 + $0x58] sm:$0xff] %vm162_vm0, %v624_v41  ;;  %v500_v59 = vmul.f32 %v724_v38, %v1292_v55  ;;  %731 = vrsqrt.f32 %v460_v27  ;;  %v461_v19 = vadd.f32 1e-05, %v445_v30 }
 0x151   :  { %673 = vst [vmem:[%s1800_s4 + $0x60] sm:$0xff] %v625_v61  ;;  %674 = vst [vmem:[%s1800_s4 + $0x68] sm:$0xff] %v626_v4  ;;  %v563_v53 = vmul.f32 %v1480_v42, %v498_v51  ;;  %v501_v58 = vmul.f32 %v726_v37, %v1298_v28  ;;  %v502_v55 = vmul.f32 %v726_v37, %v1301_v0  ;;  %v446_v34 = vmul.f32 0.0028571428, %v414_v14 }
 0x152   :  { %675 = vst.msk [vmem:[%s1800_s4 + $0x70] sm:$0xff] %vm162_vm0, %v627_v5  ;;  %v503_v20 = vmul.f32 %v726_v37, %v1304_v1  ;;  %v564_v3 = vmul.f32 %v1482_v43, %v499_v39  ;;  %v565_v29 = vmul.f32 %v1484_v57, %v500_v59  ;;  %733 = vrsqrt.f32 %v461_v19  ;;  %v424_v38 = vpop.xlane.xlu1 %423 }
 0x153   :  { %v628_v46 = vadd.f32 %v1486_v10, %v563_v53  ;;  %v566_v56 = vmul.f32 %v1480_v42, %v501_v58  ;;  %v567_v47 = vmul.f32 %v1482_v43, %v502_v55  ;;  %v462_v22 = vadd.f32 1e-05, %v446_v34  ;;  %v429_v5 = vpop.xlane.xlu0 %428 }
 0x154   :  { %v568_v62 = vmul.f32 %v1484_v57, %v503_v20  ;;  %v728_v28 = vpop.eup %727  ;;  %v629_v0 = vadd.f32 %v1488_v26, %v564_v3  ;;  %v630_v1 = vadd.f32 %v1490_v35, %v565_v29  ;;  %v447_v50 = vmul.f32 0.0028571428, %v419_v36 }
 0x155   :  { %676 = vst [vmem:[%s1800_s4 + $0x78] sm:$0xff] %v628_v46  ;;  %v631_v13 = vadd.f32 %v1486_v10, %v566_v56  ;;  %v632_v44 = vadd.f32 %v1488_v26, %v567_v47  ;;  %v504_v18 = vmul.f32 %v728_v28, %v1311_v15  ;;  %v505_v41 = vmul.f32 %v728_v28, %v1314_v16 }
 0x156   :  { %v633_v17 = vadd.f32 %v1490_v35, %v568_v62  ;;  %v730_v40 = vpop.eup %729  ;;  %677 = vst [vmem:[%s1800_s4 + $0x80] sm:$0xff] %v629_v0  ;;  %678 = vst.msk [vmem:[%s1800_s4 + $0x88] sm:$0xff] %vm162_vm0, %v630_v1  ;;  %v506_v27 = vmul.f32 %v728_v28, %v1317_v24  ;;  %735 = vrsqrt.f32 %v462_v22  ;;  %v463_v30 = vadd.f32 1e-05, %v447_v50  ;;  %v1815_v24 = vld [vmem:[#allocation4_spill] sm:$0xff]  ;;  %v434_v46 = vpop.xlane.xlu1 %433 }
 0x157   :  { %679 = vst [vmem:[%s1800_s4 + $0x90] sm:$0xff] %v631_v13  ;;  %680 = vst [vmem:[%s1800_s4 + $0x98] sm:$0xff] %v632_v44  ;;  %v569_v15 = vmul.f32 %v1480_v42, %v504_v18  ;;  %v507_v16 = vmul.f32 %v730_v40, %v1327_v33  ;;  %v508_v61 = vmul.f32 %v730_v40, %v1815_v24  ;;  %v448_v37 = vmul.f32 0.0028571428, %v424_v38 }
 0x158   :  { %681 = vst.msk [vmem:[%s1800_s4 + $0xa0] sm:$0xff] %vm162_vm0, %v633_v17  ;;  %v509_v4 = vmul.f32 %v730_v40, %v1333_v12  ;;  %v570_v51 = vmul.f32 %v1482_v43, %v505_v41  ;;  %v571_v14 = vmul.f32 %v1484_v57, %v506_v27  ;;  %737 = vrsqrt.f32 %v463_v30 }
 0x159   :  { %v634_v39 = vadd.f32 %v1486_v10, %v569_v15  ;;  %v572_v59 = vmul.f32 %v1480_v42, %v507_v16  ;;  %v573_v19 = vmul.f32 %v1482_v43, %v508_v61  ;;  %v464_v55 = vadd.f32 1e-05, %v448_v37 }
 0x15a   :  { %v574_v53 = vmul.f32 %v1484_v57, %v509_v4  ;;  %v732_v33 = vpop.eup %731  ;;  %v635_v58 = vadd.f32 %v1488_v26, %v570_v51  ;;  %v636_v12 = vadd.f32 %v1490_v35, %v571_v14  ;;  %v449_v20 = vmul.f32 0.0028571428, %v429_v5 }
 0x15b   :  { %682 = vst [vmem:[%s1800_s4 + $0xa8] sm:$0xff] %v634_v39  ;;  %v637_v36 = vadd.f32 %v1486_v10, %v572_v59  ;;  %v638_v3 = vadd.f32 %v1488_v26, %v573_v19  ;;  %v510_v34 = vmul.f32 %v732_v33, %v1339_v7  ;;  %v511_v47 = vmul.f32 %v732_v33, %v1342_v48 }
 0x15c   :  { %v639_v29 = vadd.f32 %v1490_v35, %v574_v53  ;;  %v734_v56 = vpop.eup %733  ;;  %683 = vst [vmem:[%s1800_s4 + $0xb0] sm:$0xff] %v635_v58  ;;  %684 = vst.msk [vmem:[%s1800_s4 + $0xb8] sm:$0xff] %vm162_vm0, %v636_v12  ;;  %v512_v62 = vmul.f32 %v732_v33, %v1345_v49  ;;  %739 = vrsqrt.f32 %v464_v55  ;;  %v465_v28 = vadd.f32 1e-05, %v449_v20 }
 0x15d   :  { %685 = vst [vmem:[%s1800_s4 + $0xc0] sm:$0xff] %v637_v36  ;;  %686 = vst [vmem:[%s1800_s4 + $0xc8] sm:$0xff] %v638_v3  ;;  %v575_v7 = vmul.f32 %v1480_v42, %v510_v34  ;;  %v513_v48 = vmul.f32 %v734_v56, %v1352_v63  ;;  %v514_v49 = vmul.f32 %v734_v56, %v1355_v2  ;;  %v450_v50 = vmul.f32 0.0028571428, %v434_v46 }
 0x15e   :  { %687 = vst.msk [vmem:[%s1800_s4 + $0xd0] sm:$0xff] %vm162_vm0, %v639_v29  ;;  %v515_v0 = vmul.f32 %v734_v56, %v1358_v11  ;;  %v576_v1 = vmul.f32 %v1482_v43, %v511_v47  ;;  %v577_v22 = vmul.f32 %v1484_v57, %v512_v62  ;;  %741 = vrsqrt.f32 %v465_v28 }
 0x15f   :  { %v640_v13 = vadd.f32 %v1486_v10, %v575_v7  ;;  %v578_v44 = vmul.f32 %v1480_v42, %v513_v48  ;;  %v579_v17 = vmul.f32 %v1482_v43, %v514_v49  ;;  %v466_v11 = vadd.f32 1e-05, %v450_v50  ;;  %v1817_v49 = vld [vmem:[#allocation6_spill] sm:$0xff] }
 0x160   :  { %v580_v18 = vmul.f32 %v1484_v57, %v515_v0  ;;  %v736_v38 = vpop.eup %735  ;;  %v641_v63 = vadd.f32 %v1488_v26, %v576_v1  ;;  %v642_v2 = vadd.f32 %v1490_v35, %v577_v22  ;;  %v1818_v22 = vld [vmem:[#allocation7_spill] sm:$0xff] }
 0x161   :  { %688 = vst [vmem:[%s1800_s4 + $0xd8] sm:$0xff] %v640_v13  ;;  %v643_v40 = vadd.f32 %v1486_v10, %v578_v44  ;;  %v644_v41 = vadd.f32 %v1488_v26, %v579_v17  ;;  %v516_v30 = vmul.f32 %v736_v38, %v1368_v23  ;;  %v517_v16 = vmul.f32 %v736_v38, %v1371_v31 }
 0x162   :  { %v645_v27 = vadd.f32 %v1490_v35, %v580_v18  ;;  %v738_v15 = vpop.eup %737  ;;  %689 = vst [vmem:[%s1800_s4 + $0xe0] sm:$0xff] %v641_v63  ;;  %690 = vst.msk [vmem:[%s1800_s4 + $0xe8] sm:$0xff] %vm162_vm0, %v642_v2  ;;  %v518_v24 = vmul.f32 %v736_v38, %v1374_v6  ;;  %743 = vrsqrt.f32 %v466_v11 }
 0x163   :  { %691 = vst [vmem:[%s1800_s4 + $0xf0] sm:$0xff] %v643_v40  ;;  %692 = vst [vmem:[%s1800_s4 + $0xf8] sm:$0xff] %v644_v41  ;;  %v581_v23 = vmul.f32 %v1480_v42, %v516_v30  ;;  %v519_v31 = vmul.f32 %v738_v15, %v1386_v60  ;;  %v520_v6 = vmul.f32 %v738_v15, %v1389_v45 }
 0x164   :  { %693 = vst.msk [vmem:[%s1800_s4 + $0x100] sm:$0xff] %vm162_vm0, %v645_v27  ;;  %v521_v61 = vmul.f32 %v738_v15, %v1392_v52  ;;  %v582_v4 = vmul.f32 %v1482_v43, %v517_v16  ;;  %v583_v5 = vmul.f32 %v1484_v57, %v518_v24 }
 0x165   :  { %v646_v51 = vadd.f32 %v1486_v10, %v581_v23  ;;  %v584_v14 = vmul.f32 %v1480_v42, %v519_v31  ;;  %v585_v37 = vmul.f32 %v1482_v43, %v520_v6 }
 0x166   :  { %v586_v39 = vmul.f32 %v1484_v57, %v521_v61  ;;  %v740_v59 = vpop.eup %739  ;;  %v647_v19 = vadd.f32 %v1488_v26, %v582_v4  ;;  %v648_v60 = vadd.f32 %v1490_v35, %v583_v5 }
 0x167   :  { %694 = vst [vmem:[%s1800_s4 + $0x108] sm:$0xff] %v646_v51  ;;  %v649_v45 = vadd.f32 %v1486_v10, %v584_v14  ;;  %v650_v52 = vadd.f32 %v1488_v26, %v585_v37  ;;  %v522_v33 = vmul.f32 %v740_v59, %v1395_v32  ;;  %v523_v12 = vmul.f32 %v740_v59, %v1398_v25 }
 0x168   :  { %v651_v53 = vadd.f32 %v1490_v35, %v586_v39  ;;  %v742_v58 = vpop.eup %741  ;;  %695 = vst [vmem:[%s1800_s4 + $0x110] sm:$0xff] %v647_v19  ;;  %696 = vst.msk [vmem:[%s1800_s4 + $0x118] sm:$0xff] %vm162_vm0, %v648_v60  ;;  %v524_v55 = vmul.f32 %v740_v59, %v1401_v9  ;;  %v1816_v9 = vld [vmem:[#allocation5_spill] sm:$0xff] }
 0x169   :  { %697 = vst [vmem:[%s1800_s4 + $0x120] sm:$0xff] %v649_v45  ;;  %698 = vst [vmem:[%s1800_s4 + $0x128] sm:$0xff] %v650_v52  ;;  %v587_v32 = vmul.f32 %v1480_v42, %v522_v33  ;;  %v525_v20 = vmul.f32 %v742_v58, %v1412_v21  ;;  %v526_v25 = vmul.f32 %v742_v58, %v1415_v8 }
 0x16a   :  { %699 = vst.msk [vmem:[%s1800_s4 + $0x130] sm:$0xff] %vm162_vm0, %v651_v53  ;;  %v527_v36 = vmul.f32 %v742_v58, %v1816_v9  ;;  %v588_v3 = vmul.f32 %v1482_v43, %v523_v12  ;;  %v589_v29 = vmul.f32 %v1484_v57, %v524_v55 }
 0x16b   :  { %v652_v34 = vadd.f32 %v1486_v10, %v587_v32  ;;  %v590_v46 = vmul.f32 %v1480_v42, %v525_v20  ;;  %v591_v56 = vmul.f32 %v1482_v43, %v526_v25 }
 0x16c   :  { %v592_v47 = vmul.f32 %v1484_v57, %v527_v36  ;;  %v744_v62 = vpop.eup %743  ;;  %v653_v28 = vadd.f32 %v1488_v26, %v588_v3  ;;  %v654_v21 = vadd.f32 %v1490_v35, %v589_v29 }
 0x16d   :  { %700 = vst [vmem:[%s1800_s4 + $0x138] sm:$0xff] %v652_v34  ;;  %v655_v8 = vadd.f32 %v1486_v10, %v590_v46  ;;  %v656_v7 = vadd.f32 %v1488_v26, %v591_v56  ;;  %v528_v0 = vmul.f32 %v744_v62, %v1817_v49  ;;  %v529_v1 = vmul.f32 %v744_v62, %v1424_v54 }
 0x16e   :  { %v657_v48 = vadd.f32 %v1490_v35, %v592_v47  ;;  %701 = vst [vmem:[%s1800_s4 + $0x140] sm:$0xff] %v653_v28  ;;  %702 = vst.msk [vmem:[%s1800_s4 + $0x148] sm:$0xff] %vm162_vm0, %v654_v21  ;;  %v530_v50 = vmul.f32 %v744_v62, %v1818_v22 }
 0x16f   :  { %703 = vst [vmem:[%s1800_s4 + $0x150] sm:$0xff] %v655_v8  ;;  %704 = vst [vmem:[%s1800_s4 + $0x158] sm:$0xff] %v656_v7  ;;  %v593_v13 = vmul.f32 %v1480_v42, %v528_v0  ;;  %v594_v44 = vmul.f32 %v1482_v43, %v529_v1 }
 0x170   :  { %705 = vst.msk [vmem:[%s1800_s4 + $0x160] sm:$0xff] %vm162_vm0, %v657_v48  ;;  %v595_v54 = vmul.f32 %v1484_v57, %v530_v50 }
 0x171   :  { %v658_v17 = vadd.f32 %v1486_v10, %v593_v13  ;;  %v659_v18 = vadd.f32 %v1488_v26, %v594_v44 }
 0x172   :  { %v660_v38 = vadd.f32 %v1490_v35, %v595_v54 }
 0x173   :  { %706 = vst [vmem:[%s1800_s4 + $0x168] sm:$0xff] %v658_v17  ;;  %707 = vst [vmem:[%s1800_s4 + $0x170] sm:$0xff] %v659_v18 }
 0x174   :  { %708 = vst.msk [vmem:[%s1800_s4 + $0x178] sm:$0xff] %vm162_vm0, %v660_v38 }

</bundles_post_ra>
